<compile_context>
chip_gen: v7x
topology: tpu7x:2x2x1
jax: 0.10.0
libtpu: 0.0.40
codegen_flags: <defaults>
</compile_context>

<pallas_src>
import math

import jax
import jax.numpy as jnp
import numpy as np
from jax.experimental import pallas as pl
from jax.experimental.pallas import tpu as pltpu

LANE = 128   # lane width (feature padding target)
SUB = 8      # sublane width (batch padding granule)
MAX_BT = 512  # max batch rows per grid step (review: raise from 128)

# ---------------------------------------------------------------------------
# Model config (synthetic "args"): args.d = 64, args.layer = [32, 16, 8]
# ---------------------------------------------------------------------------
D_IN = 64
LAYERS = [32, 16, 8]
L = len(LAYERS)                      # self.l
DARRAY = [D_IN] + LAYERS             # [64, 32, 16, 8]
LATENT = DARRAY[L]                   # 8

NW = 6                               # weight slabs: inet0, inet1, head, gnet0..2
MU_OFF = 64                          # mu head lanes  [64,72)  (also output lanes)
LV_OFF = 72                          # logvar lanes   [72,80)  == eps lanes of x slab


# ---------------------------------------------------------------------------
# Parameter construction (PyTorch nn.Linear default init, weights stored as
# (fan_in, fan_out) so the kernel computes x @ W + b).
# ---------------------------------------------------------------------------
def init_linear(key, fan_in, fan_out):
    kw, kb = jax.random.split(key)
    bound = 1.0 / math.sqrt(fan_in)
    w = jax.random.uniform(kw, (fan_in, fan_out), jnp.float32, -bound, bound)
    b = jax.random.uniform(kb, (fan_out,), jnp.float32, -bound, bound)
    return w, b


def make_params(key):
    """Builds all 7 Linear layers of the VAE deterministically."""
    keys = jax.random.split(key, (L - 1) + 2 + L)
    ki = 0
    params = {"inet": [], "gnet": []}
    for i in range(L - 1):                                   # encoder
        params["inet"].append(init_linear(keys[ki], DARRAY[i], DARRAY[i + 1]))
        ki += 1
    params["mu"] = init_linear(keys[ki], DARRAY[L - 1], DARRAY[L]); ki += 1
    params["sigma"] = init_linear(keys[ki], DARRAY[L - 1], DARRAY[L]); ki += 1
    for i in range(L):                                       # decoder
        params["gnet"].append(init_linear(keys[ki], DARRAY[L - i], DARRAY[L - i - 1]))
        ki += 1
    return params


def prepare_padded_params(params):
    """One-time (hoisted) packing of all layers into two device arrays.

    w_all: (NW, 128, 128) f32
      slab 2: mu head in cols [64,72), sigma head in cols [72,80)
      slab 3: gnet[0] weights duplicated on rows [64,72) AND [72,80) so that
              the matmul itself sums mu@W + (eps*std)@W  (= z @ W).
    b_all: (NW, 1, 128) f32 matching biases (head biases on the same cols).
    """
    w_all = np.zeros((NW, LANE, LANE), np.float32)
    b_all = np.zeros((NW, 1, LANE), np.float32)

    def put_w(idx, w, row=0, col=0):
        w = np.asarray(w, np.float32)
        w_all[idx, row:row + w.shape[0], col:col + w.shape[1]] = w

    def put_b(idx, b, col=0):
        b = np.asarray(b, np.float32)
        b_all[idx, 0, col:col + b.shape[0]] = b

    (w0, b0), (w1, b1) = params["inet"]
    put_w(0, w0); put_b(0, b0)
    put_w(1, w1); put_b(1, b1)

    wmu, bmu = params["mu"]
    wsg, bsg = params["sigma"]
    put_w(2, wmu, col=MU_OFF); put_b(2, bmu, col=MU_OFF)     # mu  -> [64,72)
    put_w(2, wsg, col=LV_OFF); put_b(2, bsg, col=LV_OFF)     # lv  -> [72,80)

    (g0, gb0), (g1, gb1), (g2, gb2) = params["gnet"]
    put_w(3, g0, row=MU_OFF)          # mu rows
    put_w(3, g0, row=LV_OFF)          # eps*std rows (duplicated -> linearity)
    put_b(3, gb0)
    put_w(4, g1); put_b(4, gb1)
    put_w(5, g2); put_b(5, gb2)

    return jnp.asarray(w_all), jnp.asarray(b_all)


# ---------------------------------------------------------------------------
# Pallas kernel: full forward (encode -> reparameterize -> decode) on one
# (BT, 128) activation tile, all weights resident in VMEM.
#
# Input slab layout : x in lanes [0,64), eps in lanes [72,80), zeros elsewhere.
# Output slab layout: recon in lanes [0,64), mu in [64,72), logvar in [72,80).
# ---------------------------------------------------------------------------
def vae_kernel(xin_ref, w_ref, b_ref, out_ref):
    f32 = jnp.float32
    xin = xin_ref[...]
    # --- encode: ReLU(Linear) x (l-1).  Weight rows >= 64 are zero, so the
    # eps lanes of the input slab do not leak into the encoder. ---
    h = jnp.maximum(jnp.dot(xin, w_ref[0], preferred_element_type=f32) + b_ref[0], 0.0)
    h = jnp.maximum(jnp.dot(h, w_ref[1], preferred_element_type=f32) + b_ref[1], 0.0)
    # --- fused mu/logvar head: mu at lanes [64,72), logvar at lanes [72,80) ---
    head = jnp.dot(h, w_ref[2], preferred_element_type=f32) + b_ref[2]
    # --- reparameterize (training mode), no roll / no extra matmul:
    #  * logvar shares lanes with eps, so eps*std is a single VPU multiply;
    #  * mu is kept on its own lanes (masked out of the product lanes) and the
    #    duplicated rows of w_ref[3] make the first decoder matmul compute
    #    mu@W + (eps*std)@W == z@W.  All other lanes (x copy, zeros) are
    #    finite and hit exactly-zero weight rows. ---
    lane = jax.lax.broadcasted_iota(jnp.int32, head.shape, 1)
    mu_only = jnp.where((lane >= MU_OFF) & (lane < MU_OFF + LATENT), head, 0.0)
    d = xin * jnp.exp(0.5 * head) + mu_only
    # --- decode: ReLU(Linear) x (l-1), final Linear with no activation ---
    h = jnp.maximum(jnp.dot(d, w_ref[3], preferred_element_type=f32) + b_ref[3], 0.0)
    h = jnp.maximum(jnp.dot(h, w_ref[4], preferred_element_type=f32) + b_ref[4], 0.0)
    recon = jnp.dot(h, w_ref[5], preferred_element_type=f32) + b_ref[5]
    # --- fused output: recon is exactly zero on lanes [64,128) and head is
    # exactly zero on lanes [0,64), so one add packs everything. ---
    out_ref[...] = recon + head


# ---------------------------------------------------------------------------
# Host wrapper (fully jitted so pad / slice fuse with the kernel dispatch).
# ---------------------------------------------------------------------------
def _ceil_div(a, b):
    return -(-a // b)


def _round_up(a, m):
    return _ceil_div(a, m) * m


def _choose_tiles(B):
    """Returns (BT, n_tiles).  Single tile up to 256 rows; above that, >= 2
    even tiles (v7x megacore) capped around MAX_BT rows, with BT chosen to
    minimize padded rows."""
    if B <= 256:
        return _round_up(max(B, SUB), SUB), 1
    n = max(2, _ceil_div(B, MAX_BT))
    if n % 2:
        n += 1
    bt = _round_up(_ceil_div(B, n), SUB)
    return bt, _ceil_div(B, bt)


def _vae_forward_impl(x, eps, w_all, b_all):
    """x: (B, D_IN) f32, eps: (B, LATENT) f32.  Returns (recon, mu, logvar)."""
    B = x.shape[0]
    assert x.shape[1] == D_IN and eps.shape == (B, LATENT)

    BT, n_tiles = _choose_tiles(B)
    Bp = BT * n_tiles

    # Single fused input slab: x -> lanes [0,64), eps -> lanes [72,80).
    xin = jnp.zeros((Bp, LANE), jnp.float32)
    xin = xin.at[:B, :D_IN].set(x.astype(jnp.float32))
    xin = xin.at[:B, LV_OFF:LV_OFF + LATENT].set(eps.astype(jnp.float32))

    out_shape = jax.ShapeDtypeStruct((Bp, LANE), jnp.float32)

    if n_tiles == 1:
        # Grid-free: whole arrays land in VMEM once, no double buffering.
        vmem = pl.BlockSpec(memory_space=pltpu.MemorySpace.VMEM)
        out = pl.pallas_call(
            vae_kernel,
            out_shape=out_shape,
            in_specs=[vmem, vmem, vmem],
            out_specs=vmem,
        )(xin, w_all, b_all)
    else:
        # Batch-tiled grid: weights resident (constant index_map); batch axis
        # parallel with an even tile count so it shards across TensorCores.
        act_spec = pl.BlockSpec((BT, LANE), lambda i: (i, 0))
        out = pl.pallas_call(
            vae_kernel,
            out_shape=out_shape,
            grid_spec=pltpu.PrefetchScalarGridSpec(
                num_scalar_prefetch=0,
                grid=(n_tiles,),
                in_specs=[
                    act_spec,
                    pl.BlockSpec((NW, LANE, LANE), lambda i: (0, 0, 0)),
                    pl.BlockSpec((NW, 1, LANE), lambda i: (0, 0, 0)),
                ],
                out_specs=act_spec,
            ),
            compiler_params=pltpu.CompilerParams(
                dimension_semantics=("parallel",)),
        )(xin, w_all, b_all)

    recon = out[:B, :D_IN]
    mu = out[:B, MU_OFF:MU_OFF + LATENT]
    logvar = out[:B, LV_OFF:LV_OFF + LATENT]
    return recon, mu, logvar


vae_forward = jax.jit(_vae_forward_impl)


# ---------------------------------------------------------------------------
# Pure-JAX reference (mirrors the PyTorch forward) for a correctness check.
# ---------------------------------------------------------------------------
def vae_reference(x, eps, params):
    h = x
    for w, b in params["inet"]:
        h = jax.nn.relu(h @ w + b)
    wmu, bmu = params["mu"]
    wsg, bsg = params["sigma"]
    mu = h @ wmu + bmu
    logvar = h @ wsg + bsg
    z = eps * jnp.exp(0.5 * logvar) + mu
    h = z
    for i, (w, b) in enumerate(params["gnet"]):
        h = h @ w + b
        if i < L - 1:
            h = jax.nn.relu(h)
    return h, mu, logvar


if __name__ == "__main__":
    key = jax.random.PRNGKey(0)
    k_params, k_data = jax.random.split(key)

    params = make_params(k_params)
    # One-time packing of all weights/biases (hoisted out of the forward call).
    w_all, b_all = prepare_padded_params(params)

    # B=4: grid-free latency path; B=200: single larger tile (no wasted rows);
    # B=600: batch-tiled grid path with 2 even tiles (megacore split on v7x).
    for i, B in enumerate((4, 200, 600)):
        kx, ke = jax.random.split(jax.random.fold_in(k_data, i))
        x = jax.random.normal(kx, (B, D_IN), jnp.float32)
        # TODO(synk): torch.randn_like inside reparameterize is replaced by an
        # explicit deterministic eps input (training-mode semantics preserved).
        eps = jax.random.normal(ke, (B, LATENT), jnp.float32)

        recon, mu, logvar = vae_forward(x, eps, w_all, b_all)
        jax.block_until_ready((recon, mu, logvar))

        recon_r, mu_r, logvar_r = vae_reference(x, eps, params)
        np.testing.assert_allclose(np.asarray(recon), np.asarray(recon_r),
                                   rtol=1e-5, atol=1e-5)
        np.testing.assert_allclose(np.asarray(mu), np.asarray(mu_r),
                                   rtol=1e-5, atol=1e-5)
        np.testing.assert_allclose(np.asarray(logvar), np.asarray(logvar_r),
                                   rtol=1e-5, atol=1e-5)

    print("KERNEL_OK")
</pallas_src>

<mosaic_0001>
module attributes {stable_mosaic.version = 11 : i64} {
  func.func @vae_kernel(%arg0: memref<8x128xf32, #tpu.memory_space<vmem>>, %arg1: memref<6x128x128xf32, #tpu.memory_space<vmem>>, %arg2: memref<6x1x128xf32, #tpu.memory_space<vmem>>, %arg3: memref<8x128xf32, #tpu.memory_space<vmem>>) attributes {dimension_semantics = [], scalar_prefetch = 0 : i64, scratch_operands = 0 : i64, tpu.core_type = #tpu.core_type<tc>} {
    %c0 = arith.constant 0 : index
    %c0_0 = arith.constant 0 : index
    %0 = vector.load %arg0[%c0, %c0_0] : memref<8x128xf32, #tpu.memory_space<vmem>>, vector<8x128xf32>
    %c0_1 = arith.constant 0 : index
    %c0_2 = arith.constant 0 : index
    %c0_3 = arith.constant 0 : index
    %1 = vector.load %arg1[%c0_1, %c0_2, %c0_3] : memref<6x128x128xf32, #tpu.memory_space<vmem>>, vector<1x128x128xf32>
    %2 = vector.shape_cast %1 : vector<1x128x128xf32> to vector<128x128xf32>
    %cst = arith.constant dense<0.000000e+00> : vector<8x128xf32>
    %3 = tpu.matmul %0, %2, %cst {dimension_numbers = #tpu.dot_dimension_numbers<[1], [0], [0], [1], [0, 0, 1, 1], [], []>} : vector<8x128xf32>, vector<128x128xf32>, vector<8x128xf32> -> vector<8x128xf32>
    %c0_4 = arith.constant 0 : index
    %c0_5 = arith.constant 0 : index
    %c0_6 = arith.constant 0 : index
    %4 = vector.load %arg2[%c0_4, %c0_5, %c0_6] : memref<6x1x128xf32, #tpu.memory_space<vmem>>, vector<1x1x128xf32>
    %5 = vector.shape_cast %4 : vector<1x1x128xf32> to vector<1x128xf32>
    %6 = vector.broadcast %5 : vector<1x128xf32> to vector<8x128xf32>
    %7 = arith.addf %3, %6 : vector<8x128xf32>
    %cst_7 = arith.constant 0.000000e+00 : f32
    %8 = vector.broadcast %cst_7 : f32 to vector<8x128xf32>
    %9 = arith.maximumf %7, %8 : vector<8x128xf32>
    %c1 = arith.constant 1 : index
    %c0_8 = arith.constant 0 : index
    %c0_9 = arith.constant 0 : index
    %10 = vector.load %arg1[%c1, %c0_8, %c0_9] : memref<6x128x128xf32, #tpu.memory_space<vmem>>, vector<1x128x128xf32>
    %11 = vector.shape_cast %10 : vector<1x128x128xf32> to vector<128x128xf32>
    %cst_10 = arith.constant dense<0.000000e+00> : vector<8x128xf32>
    %12 = tpu.matmul %9, %11, %cst_10 {dimension_numbers = #tpu.dot_dimension_numbers<[1], [0], [0], [1], [0, 0, 1, 1], [], []>} : vector<8x128xf32>, vector<128x128xf32>, vector<8x128xf32> -> vector<8x128xf32>
    %c1_11 = arith.constant 1 : index
    %c0_12 = arith.constant 0 : index
    %c0_13 = arith.constant 0 : index
    %13 = vector.load %arg2[%c1_11, %c0_12, %c0_13] : memref<6x1x128xf32, #tpu.memory_space<vmem>>, vector<1x1x128xf32>
    %14 = vector.shape_cast %13 : vector<1x1x128xf32> to vector<1x128xf32>
    %15 = vector.broadcast %14 : vector<1x128xf32> to vector<8x128xf32>
    %16 = arith.addf %12, %15 : vector<8x128xf32>
    %cst_14 = arith.constant 0.000000e+00 : f32
    %17 = vector.broadcast %cst_14 : f32 to vector<8x128xf32>
    %18 = arith.maximumf %16, %17 : vector<8x128xf32>
    %c2 = arith.constant 2 : index
    %c0_15 = arith.constant 0 : index
    %c0_16 = arith.constant 0 : index
    %19 = vector.load %arg1[%c2, %c0_15, %c0_16] : memref<6x128x128xf32, #tpu.memory_space<vmem>>, vector<1x128x128xf32>
    %20 = vector.shape_cast %19 : vector<1x128x128xf32> to vector<128x128xf32>
    %cst_17 = arith.constant dense<0.000000e+00> : vector<8x128xf32>
    %21 = tpu.matmul %18, %20, %cst_17 {dimension_numbers = #tpu.dot_dimension_numbers<[1], [0], [0], [1], [0, 0, 1, 1], [], []>} : vector<8x128xf32>, vector<128x128xf32>, vector<8x128xf32> -> vector<8x128xf32>
    %c2_18 = arith.constant 2 : index
    %c0_19 = arith.constant 0 : index
    %c0_20 = arith.constant 0 : index
    %22 = vector.load %arg2[%c2_18, %c0_19, %c0_20] : memref<6x1x128xf32, #tpu.memory_space<vmem>>, vector<1x1x128xf32>
    %23 = vector.shape_cast %22 : vector<1x1x128xf32> to vector<1x128xf32>
    %24 = vector.broadcast %23 : vector<1x128xf32> to vector<8x128xf32>
    %25 = arith.addf %21, %24 : vector<8x128xf32>
    %26 = tpu.iota {dimensions = array<i32: 1>} : vector<8x128xi32>
    %c64_i32 = arith.constant 64 : i32
    %27 = vector.broadcast %c64_i32 : i32 to vector<8x128xi32>
    %28 = arith.cmpi sge, %26, %27 : vector<8x128xi32>
    %c72_i32 = arith.constant 72 : i32
    %29 = vector.broadcast %c72_i32 : i32 to vector<8x128xi32>
    %30 = arith.cmpi slt, %26, %29 : vector<8x128xi32>
    %31 = arith.andi %28, %30 : vector<8x128xi1>
    %cst_21 = arith.constant 0.000000e+00 : f32
    %32 = vector.broadcast %cst_21 : f32 to vector<8x128xf32>
    %33 = arith.select %31, %25, %32 : vector<8x128xi1>, vector<8x128xf32>
    %cst_22 = arith.constant 5.000000e-01 : f32
    %34 = vector.broadcast %cst_22 : f32 to vector<8x128xf32>
    %35 = arith.mulf %34, %25 : vector<8x128xf32>
    %36 = math.exp %35 : vector<8x128xf32>
    %37 = arith.mulf %0, %36 : vector<8x128xf32>
    %38 = arith.addf %37, %33 : vector<8x128xf32>
    %c3 = arith.constant 3 : index
    %c0_23 = arith.constant 0 : index
    %c0_24 = arith.constant 0 : index
    %39 = vector.load %arg1[%c3, %c0_23, %c0_24] : memref<6x128x128xf32, #tpu.memory_space<vmem>>, vector<1x128x128xf32>
    %40 = vector.shape_cast %39 : vector<1x128x128xf32> to vector<128x128xf32>
    %cst_25 = arith.constant dense<0.000000e+00> : vector<8x128xf32>
    %41 = tpu.matmul %38, %40, %cst_25 {dimension_numbers = #tpu.dot_dimension_numbers<[1], [0], [0], [1], [0, 0, 1, 1], [], []>} : vector<8x128xf32>, vector<128x128xf32>, vector<8x128xf32> -> vector<8x128xf32>
    %c3_26 = arith.constant 3 : index
    %c0_27 = arith.constant 0 : index
    %c0_28 = arith.constant 0 : index
    %42 = vector.load %arg2[%c3_26, %c0_27, %c0_28] : memref<6x1x128xf32, #tpu.memory_space<vmem>>, vector<1x1x128xf32>
    %43 = vector.shape_cast %42 : vector<1x1x128xf32> to vector<1x128xf32>
    %44 = vector.broadcast %43 : vector<1x128xf32> to vector<8x128xf32>
    %45 = arith.addf %41, %44 : vector<8x128xf32>
    %cst_29 = arith.constant 0.000000e+00 : f32
    %46 = vector.broadcast %cst_29 : f32 to vector<8x128xf32>
    %47 = arith.maximumf %45, %46 : vector<8x128xf32>
    %c4 = arith.constant 4 : index
    %c0_30 = arith.constant 0 : index
    %c0_31 = arith.constant 0 : index
    %48 = vector.load %arg1[%c4, %c0_30, %c0_31] : memref<6x128x128xf32, #tpu.memory_space<vmem>>, vector<1x128x128xf32>
    %49 = vector.shape_cast %48 : vector<1x128x128xf32> to vector<128x128xf32>
    %cst_32 = arith.constant dense<0.000000e+00> : vector<8x128xf32>
    %50 = tpu.matmul %47, %49, %cst_32 {dimension_numbers = #tpu.dot_dimension_numbers<[1], [0], [0], [1], [0, 0, 1, 1], [], []>} : vector<8x128xf32>, vector<128x128xf32>, vector<8x128xf32> -> vector<8x128xf32>
    %c4_33 = arith.constant 4 : index
    %c0_34 = arith.constant 0 : index
    %c0_35 = arith.constant 0 : index
    %51 = vector.load %arg2[%c4_33, %c0_34, %c0_35] : memref<6x1x128xf32, #tpu.memory_space<vmem>>, vector<1x1x128xf32>
    %52 = vector.shape_cast %51 : vector<1x1x128xf32> to vector<1x128xf32>
    %53 = vector.broadcast %52 : vector<1x128xf32> to vector<8x128xf32>
    %54 = arith.addf %50, %53 : vector<8x128xf32>
    %cst_36 = arith.constant 0.000000e+00 : f32
    %55 = vector.broadcast %cst_36 : f32 to vector<8x128xf32>
    %56 = arith.maximumf %54, %55 : vector<8x128xf32>
    %c5 = arith.constant 5 : index
    %c0_37 = arith.constant 0 : index
    %c0_38 = arith.constant 0 : index
    %57 = vector.load %arg1[%c5, %c0_37, %c0_38] : memref<6x128x128xf32, #tpu.memory_space<vmem>>, vector<1x128x128xf32>
    %58 = vector.shape_cast %57 : vector<1x128x128xf32> to vector<128x128xf32>
    %cst_39 = arith.constant dense<0.000000e+00> : vector<8x128xf32>
    %59 = tpu.matmul %56, %58, %cst_39 {dimension_numbers = #tpu.dot_dimension_numbers<[1], [0], [0], [1], [0, 0, 1, 1], [], []>} : vector<8x128xf32>, vector<128x128xf32>, vector<8x128xf32> -> vector<8x128xf32>
    %c5_40 = arith.constant 5 : index
    %c0_41 = arith.constant 0 : index
    %c0_42 = arith.constant 0 : index
    %60 = vector.load %arg2[%c5_40, %c0_41, %c0_42] : memref<6x1x128xf32, #tpu.memory_space<vmem>>, vector<1x1x128xf32>
    %61 = vector.shape_cast %60 : vector<1x1x128xf32> to vector<1x128xf32>
    %62 = vector.broadcast %61 : vector<1x128xf32> to vector<8x128xf32>
    %63 = arith.addf %59, %62 : vector<8x128xf32>
    %64 = arith.addf %63, %25 : vector<8x128xf32>
    %c0_43 = arith.constant 0 : index
    %c0_44 = arith.constant 0 : index
    %65 = vector.load %arg3[%c0_43, %c0_44] : memref<8x128xf32, #tpu.memory_space<vmem>>, vector<8x128xf32>
    tpu.vector_store %arg3[%c0_43, %c0_44], %64 {strides = array<i32>} : memref<8x128xf32, #tpu.memory_space<vmem>>, vector<8x128xf32>,
    return
  }
}

</mosaic_0001>

<bundles_post_ra>
// kernel: _vae_forward_impl.1
= control target key start
LH: loop header
LB: loop body
LE: loop exit
PB: predicated region body
PF: predicated region fallthrough
CT: control target
= control target key end

     0   :  { %8 = vsyncpa [#allocation3], 0  ;;  %s1118_s12 = smov [#allocation2]   ;;  %s1249_s0 = inlined_call_operand.vmem [shape: f32[8,128], index: 0, kind: input, shape index: {}]   ;;  %s1250_s1 = inlined_call_operand.hbm [shape: f32[6,128,128], index: 1, kind: input, shape index: {}]   ;;  %s1251_s2 = inlined_call_operand.vmem [shape: f32[6,1,128], index: 2, kind: input, shape index: {}]   ;;  %s1252_s3 = inlined_call_operand.vmem [shape: f32[8,128], index: 3, kind: output, shape index: {}]  }
   0x1   :  { %s16_s13 = sshll.u32 %s1118_s12, 4  ;;  %s1094_s16 = scalar_lea.hbm %s1250_s1, 12288  ;;  %s17_s13 = int_to_ptr.vmem [resolvable:$true] %s16_s13 }
   0x2   :  { %p1095_p0 = scmp.ne.s32.totalorder %s1250_s1, %s1094_s16  ;;  %p1098_p1 = scmp.lt.u32.totalorder %s1094_s16, %s1250_s1 }
   0x4   :  { %p1100_p2 = pnand %p1098_p1, %p1095_p0 }
   0x6   :  { %1103 = shalt.err (!%p1100_p2)
}
   0x7   :  { %s1104_s21 = scalar_lea.vmem %s17_s13, 12288  ;;  %p1109_p4 = scmp.lt.s32.totalorder %s17_s13, %s17_s13 }
   0x8   :  { %p1105_p3 = scmp.ne.s32.totalorder %s17_s13, %s1104_s21  ;;  %p1110_p5 = scmp.lt.s32.totalorder %s1104_s21, %s1104_s21 }
   0xa   :  { %p1111_p6 = por %p1110_p5, %p1109_p4 }
   0xc   :  { %p1112_p7 = pnand %p1111_p6, %p1105_p3 }
   0xe   :  { %1115 = shalt.err (!%p1112_p7)
}
   0xf   :  { %s1119_s22 = smov 128   ;;  %s1120_s23 = smov 8  }
  0x10   :  { %22 = dma.hbm_to_vmem [thread:$0]  %s1250_s1, 12288, %s17_s13, [#allocation3], %s1119_s22, %s1119_s22, %s1120_s23  }
  0x11   :  { %1116 = dma.done.wait [#allocation3], 12288  }
  0x12   :  { %1117 = vsyncadd [#allocation3], 4294955008  ;;  %v1121_v0 = vmov 0.0|0.0   ;;  %vm1122_vm0 = vmmov 0   ;;  %v1123_v1 = vmov 0.0   ;;  %v29_v2 = vld [vmem:[#allocation2] sm:$0xff] }
  0x13   :  { %942 = vmatprep.subr.bf16.mxu0 %v1121_v0  ;;  %764 = vmatprep.mubr.msk.f32.mxu0 %vm1122_vm0, %v1123_v1  ;;  %v30_v3 = vld [vmem:[#allocation2 + $0x8] sm:$0xff]  ;;  %v31_v4 = vld [vmem:[#allocation2 + $0x10] sm:$0xff]  ;;  %v32_v6 = vld [vmem:[#allocation2 + $0x18] sm:$0xff] }
  0x14   :  { %966 = vmatprep.subr.bf16.mxu1 %v1121_v0  ;;  %799 = vmatprep.mubr.msk.f32.mxu1 %vm1122_vm0, %v1123_v1  ;;  %v943_v5 = vpack.c.bf16 %v30_v3, %v29_v2  ;;  %v946_v7 = vpack.c.bf16 %v32_v6, %v31_v4  ;;  %v33_v8 = vld [vmem:[#allocation2 + $0x20] sm:$0xff]  ;;  %v34_v9 = vld [vmem:[#allocation2 + $0x28] sm:$0xff]  ;;  %v126_v12 = vld [vmem:[#allocation2 + $0x90] sm:$0xff] }
  0x15   :  { %v124_v10 = vld [vmem:[#allocation2 + $0x80] sm:$0xff]  ;;  %v125_v11 = vld [vmem:[#allocation2 + $0x88] sm:$0xff]  ;;  %v127_v13 = vld [vmem:[#allocation2 + $0x98] sm:$0xff]  ;;  %v949_v14 = vpack.c.bf16 %v34_v9, %v33_v8 }
  0x16   :  { %944 = vmatpush3.bf16.msra.mxu0 %v943_v5  ;;  %v967_v15 = vpack.c.bf16 %v125_v11, %v124_v10  ;;  %v35_v16 = vld [vmem:[#allocation2 + $0x30] sm:$0xff]  ;;  %v36_v17 = vld [vmem:[#allocation2 + $0x38] sm:$0xff]  ;;  %v970_v18 = vpack.c.bf16 %v127_v13, %v126_v12  ;;  %v128_v19 = vld [vmem:[#allocation2 + $0xa0] sm:$0xff] }
  0x17   :  { %945 = vmatprep.subr.bf16.mxu0 %v1121_v0  ;;  %v129_v20 = vld [vmem:[#allocation2 + $0xa8] sm:$0xff]  ;;  %v952_v21 = vpack.c.bf16 %v36_v17, %v35_v16  ;;  %v37_v22 = vld [vmem:[#allocation2 + $0x40] sm:$0xff]  ;;  %v130_v25 = vld [vmem:[#allocation2 + $0xb0] sm:$0xff] }
  0x18   :  { %968 = vmatpush3.bf16.msra.mxu1 %v967_v15  ;;  %v38_v23 = vld [vmem:[#allocation2 + $0x48] sm:$0xff]  ;;  %v973_v24 = vpack.c.bf16 %v129_v20, %v128_v19  ;;  %v131_v26 = vld [vmem:[#allocation2 + $0xb8] sm:$0xff]  ;;  %v39_v28 = vld [vmem:[#allocation2 + $0x50] sm:$0xff] }
  0x19   :  { %969 = vmatprep.subr.bf16.mxu1 %v1121_v0  ;;  %v955_v27 = vpack.c.bf16 %v38_v23, %v37_v22  ;;  %v40_v29 = vld [vmem:[#allocation2 + $0x58] sm:$0xff]  ;;  %v976_v30 = vpack.c.bf16 %v131_v26, %v130_v25  ;;  %v132_v31 = vld [vmem:[#allocation2 + $0xc0] sm:$0xff]  ;;  %v133_v32 = vld [vmem:[#allocation2 + $0xc8] sm:$0xff] }
  0x1a   :  { %947 = vmatpush3.bf16.msra.mxu0 %v946_v7  ;;  %v958_v33 = vpack.c.bf16 %v40_v29, %v39_v28  ;;  %v41_v34 = vld [vmem:[#allocation2 + $0x60] sm:$0xff]  ;;  %v42_v35 = vld [vmem:[#allocation2 + $0x68] sm:$0xff]  ;;  %v979_v36 = vpack.c.bf16 %v133_v32, %v132_v31  ;;  %v134_v37 = vld [vmem:[#allocation2 + $0xd0] sm:$0xff] }
  0x1b   :  { %948 = vmatprep.subr.bf16.mxu0 %v1121_v0  ;;  %v135_v38 = vld [vmem:[#allocation2 + $0xd8] sm:$0xff]  ;;  %v961_v39 = vpack.c.bf16 %v42_v35, %v41_v34  ;;  %v43_v40 = vld [vmem:[#allocation2 + $0x70] sm:$0xff]  ;;  %v136_v43 = vld [vmem:[#allocation2 + $0xe0] sm:$0xff] }
  0x1c   :  { %971 = vmatpush3.bf16.msra.mxu1 %v970_v18  ;;  %v44_v41 = vld [vmem:[#allocation2 + $0x78] sm:$0xff]  ;;  %v982_v42 = vpack.c.bf16 %v135_v38, %v134_v37  ;;  %v137_v44 = vld [vmem:[#allocation2 + $0xe8] sm:$0xff]  ;;  %v1178_v47 = vld [vmem:[%s1249_s0] sm:$0xff] }
  0x1d   :  { %972 = vmatprep.subr.bf16.mxu1 %v1121_v0  ;;  %v964_v45 = vpack.c.bf16 %v44_v41, %v43_v40  ;;  %v985_v46 = vpack.c.bf16 %v137_v44, %v136_v43  ;;  %v138_v48 = vld [vmem:[#allocation2 + $0xf0] sm:$0xff]  ;;  %v139_v49 = vld [vmem:[#allocation2 + $0xf8] sm:$0xff]  ;;  %v220_v51 = vld [vmem:[#allocation2 + $0x100] sm:$0xff] }
  0x1e   :  { %950 = vmatpush3.bf16.msra.mxu0 %v949_v14  ;;  %v988_v50 = vpack.c.bf16 %v139_v49, %v138_v48  ;;  %v221_v52 = vld [vmem:[#allocation2 + $0x108] sm:$0xff]  ;;  %v222_v53 = vld [vmem:[#allocation2 + $0x110] sm:$0xff]  ;;  %v223_v55 = vld [vmem:[#allocation2 + $0x118] sm:$0xff] }
  0x1f   :  { %951 = vmatprep.subr.bf16.mxu0 %v1121_v0  ;;  %v991_v54 = vpack.c.bf16 %v221_v52, %v220_v51  ;;  %v994_v56 = vpack.c.bf16 %v223_v55, %v222_v53  ;;  %v224_v57 = vld [vmem:[#allocation2 + $0x120] sm:$0xff]  ;;  %v225_v58 = vld [vmem:[#allocation2 + $0x128] sm:$0xff]  ;;  %v226_v60 = vld [vmem:[#allocation2 + $0x130] sm:$0xff] }
  0x20   :  { %974 = vmatpush3.bf16.msra.mxu1 %v973_v24  ;;  %v997_v59 = vpack.c.bf16 %v225_v58, %v224_v57  ;;  %v227_v61 = vld [vmem:[#allocation2 + $0x138] sm:$0xff]  ;;  %v228_v63 = vld [vmem:[#allocation2 + $0x140] sm:$0xff]  ;;  %v229_v2 = vld [vmem:[#allocation2 + $0x148] sm:$0xff] }
  0x21   :  { %975 = vmatprep.subr.bf16.mxu1 %v1121_v0  ;;  %v1000_v62 = vpack.c.bf16 %v227_v61, %v226_v60  ;;  %v1003_v3 = vpack.c.bf16 %v229_v2, %v228_v63  ;;  %v230_v4 = vld [vmem:[#allocation2 + $0x150] sm:$0xff]  ;;  %v231_v5 = vld [vmem:[#allocation2 + $0x158] sm:$0xff]  ;;  %v232_v7 = vld [vmem:[#allocation2 + $0x160] sm:$0xff] }
  0x22   :  { %953 = vmatpush3.bf16.msra.mxu0 %v952_v21  ;;  %v1006_v6 = vpack.c.bf16 %v231_v5, %v230_v4  ;;  %v233_v8 = vld [vmem:[#allocation2 + $0x168] sm:$0xff]  ;;  %v619_v10 = vld [vmem:[%s1251_s2] ss:$0 sm:$0xff]  ;;  %v234_v15 = vld [vmem:[#allocation2 + $0x170] sm:$0xff] }
  0x23   :  { %954 = vmatprep.subr.bf16.mxu0 %v1121_v0  ;;  %v1009_v9 = vpack.c.bf16 %v233_v8, %v232_v7  ;;  %v235_v16 = vld [vmem:[#allocation2 + $0x178] sm:$0xff]  ;;  %v326_v18 = vld [vmem:[#allocation2 + $0x180] sm:$0xff]  ;;  %v327_v19 = vld [vmem:[#allocation2 + $0x188] sm:$0xff] }
  0x24   :  { %977 = vmatpush3.bf16.msra.mxu1 %v976_v30  ;;  %v1012_v17 = vpack.c.bf16 %v235_v16, %v234_v15  ;;  %v328_v20 = vld [vmem:[#allocation2 + $0x190] sm:$0xff]  ;;  %v1015_v21 = vpack.c.bf16 %v327_v19, %v326_v18  ;;  %v329_v22 = vld [vmem:[#allocation2 + $0x198] sm:$0xff]  ;;  %v330_v24 = vld [vmem:[#allocation2 + $0x1a0] sm:$0xff] }
  0x25   :  { %978 = vmatprep.subr.bf16.mxu1 %v1121_v0  ;;  %v1018_v23 = vpack.c.bf16 %v329_v22, %v328_v20  ;;  %v331_v25 = vld [vmem:[#allocation2 + $0x1a8] sm:$0xff]  ;;  %v332_v32 = vld [vmem:[#allocation2 + $0x1b0] sm:$0xff]  ;;  %v334_v35 = vld [vmem:[#allocation2 + $0x1c0] sm:$0xff] }
  0x26   :  { %956 = vmatpush3.bf16.msra.mxu0 %v955_v27  ;;  %v1021_v26 = vpack.c.bf16 %v331_v25, %v330_v24  ;;  %v621_v27 = vld [vmem:[%s1251_s2 + $0x1] ss:$0 sm:$0xff]  ;;  %v336_v38 = vld [vmem:[#allocation2 + $0x1d0] sm:$0xff]  ;;  %v423_v49 = vld [vmem:[#allocation2 + $0x208] sm:$0xff] }
  0x27   :  { %957 = vmatprep.subr.bf16.mxu0 %v1121_v0  ;;  %v338_v41 = vld [vmem:[#allocation2 + $0x1e0] sm:$0xff]  ;;  %v340_v44 = vld [vmem:[#allocation2 + $0x1f0] sm:$0xff]  ;;  %v425_v52 = vld [vmem:[#allocation2 + $0x218] sm:$0xff] }
  0x28   :  { %980 = vmatpush3.bf16.msra.mxu1 %v979_v36  ;;  %v335_v36 = vld [vmem:[#allocation2 + $0x1c8] sm:$0xff]  ;;  %v422_v48 = vld [vmem:[#allocation2 + $0x200] sm:$0xff]  ;;  %v428_v57 = vld [vmem:[#allocation2 + $0x230] sm:$0xff] }
  0x29   :  { %981 = vmatprep.subr.bf16.mxu1 %v1121_v0  ;;  %v1027_v37 = vpack.c.bf16 %v335_v36, %v334_v35  ;;  %v1039_v51 = vpack.c.bf16 %v423_v49, %v422_v48  ;;  %v427_v55 = vld [vmem:[#allocation2 + $0x228] sm:$0xff]  ;;  %v429_v58 = vld [vmem:[#allocation2 + $0x238] sm:$0xff]  ;;  %v430_v60 = vld [vmem:[#allocation2 + $0x240] sm:$0xff] }
  0x2a   :  { %959 = vmatpush3.bf16.msra.mxu0 %v958_v33  ;;  %v333_v33 = vld [vmem:[#allocation2 + $0x1b8] sm:$0xff]  ;;  %v431_v61 = vld [vmem:[#allocation2 + $0x248] sm:$0xff]  ;;  %v432_v63 = vld [vmem:[#allocation2 + $0x250] sm:$0xff] }
  0x2b   :  { %960 = vmatprep.subr.bf16.mxu0 %v1121_v0  ;;  %v1024_v34 = vpack.c.bf16 %v333_v33, %v332_v32  ;;  %v433_v2 = vld [vmem:[#allocation2 + $0x258] sm:$0xff]  ;;  %v434_v4 = vld [vmem:[#allocation2 + $0x260] sm:$0xff]  ;;  %v435_v5 = vld [vmem:[#allocation2 + $0x268] sm:$0xff] }
  0x2c   :  { %983 = vmatpush3.bf16.msra.mxu1 %v982_v42  ;;  %v339_v42 = vld [vmem:[#allocation2 + $0x1e8] sm:$0xff]  ;;  %v623_v7 = vld [vmem:[%s1251_s2 + $0x2] ss:$0 sm:$0xff]  ;;  %v436_v19 = vld [vmem:[#allocation2 + $0x270] sm:$0xff] }
  0x2d   :  { %984 = vmatprep.subr.bf16.mxu1 %v1121_v0  ;;  %v1033_v43 = vpack.c.bf16 %v339_v42, %v338_v41  ;;  %v437_v20 = vld [vmem:[#allocation2 + $0x278] sm:$0xff]  ;;  %v518_v22 = vld [vmem:[#allocation2 + $0x280] sm:$0xff]  ;;  %v520_v24 = vld [vmem:[#allocation2 + $0x290] sm:$0xff] }
  0x2e   :  { %962 = vmatpush3.bf16.msra.mxu0 %v961_v39  ;;  %v337_v39 = vld [vmem:[#allocation2 + $0x1d8] sm:$0xff]  ;;  %v526_v32 = vld [vmem:[#allocation2 + $0x2c0] sm:$0xff]  ;;  %v527_v33 = vld [vmem:[#allocation2 + $0x2c8] sm:$0xff] }
  0x2f   :  { %963 = vmatprep.subr.bf16.mxu0 %v1121_v0  ;;  %v1030_v40 = vpack.c.bf16 %v337_v39, %v336_v38  ;;  %v528_v35 = vld [vmem:[#allocation2 + $0x2d0] sm:$0xff]  ;;  %v529_v36 = vld [vmem:[#allocation2 + $0x2d8] sm:$0xff]  ;;  %v530_v38 = vld [vmem:[#allocation2 + $0x2e0] sm:$0xff] }
  0x30   :  { %986 = vmatpush3.bf16.msra.mxu1 %v985_v46  ;;  %v531_v39 = vld [vmem:[#allocation2 + $0x2e8] sm:$0xff]  ;;  %v625_v41 = vld [vmem:[%s1251_s2 + $0x3] ss:$0 sm:$0xff]  ;;  %v533_v48 = vld [vmem:[#allocation2 + $0x2f8] sm:$0xff] }
  0x31   :  { %987 = vmatprep.subr.bf16.mxu1 %v1121_v0 }
  0x32   :  { %965 = vmatpush3.bf16.msra.mxu0 %v964_v45  ;;  %v341_v45 = vld [vmem:[#allocation2 + $0x1f8] sm:$0xff] }
  0x33   :  { %990 = vmatprep.subr.bf16.mxu0 %v1121_v0  ;;  %v1036_v46 = vpack.c.bf16 %v341_v45, %v340_v44 }
  0x34   :  { %989 = vmatpush3.bf16.msra.mxu1 %v988_v50  ;;  %v424_v50 = vld [vmem:[#allocation2 + $0x210] sm:$0xff] }
  0x35   :  { %765 = vmatmul.mubr.f32.vlgmr.msra.gmra.mrb[0].mxu0 %v1178_v47  ;;  %1014 = vmatprep.subr.bf16.mxu1 %v1121_v0  ;;  %v1042_v53 = vpack.c.bf16 %v425_v52, %v424_v50  ;;  %v627_v50 = vld [vmem:[%s1251_s2 + $0x4] ss:$0 sm:$0xff] }
  0x36   :  { %834 = vmatprep.mubr.msk.f32.mxu0 %vm1122_vm0, %v1123_v1  ;;  %992 = vmatpush3.bf16.msra.mxu0 %v991_v54  ;;  %v426_v54 = vld [vmem:[#allocation2 + $0x220] sm:$0xff] }
  0x37   :  { %993 = vmatprep.subr.bf16.mxu0 %v1121_v0 }
  0x3a   :  { %995 = vmatpush3.bf16.msra.mxu0 %v994_v56  ;;  %v1045_v56 = vpack.c.bf16 %v427_v55, %v426_v54  ;;  %v629_v54 = vld [vmem:[%s1251_s2 + $0x5] ss:$0 sm:$0xff] }
  0x3b   :  { %996 = vmatprep.subr.bf16.mxu0 %v1121_v0 }
  0x3e   :  { %998 = vmatpush3.bf16.msra.mxu0 %v997_v59  ;;  %v1048_v59 = vpack.c.bf16 %v429_v58, %v428_v57 }
  0x3f   :  { %999 = vmatprep.subr.bf16.mxu0 %v1121_v0 }
  0x42   :  { %1001 = vmatpush3.bf16.msra.mxu0 %v1000_v62  ;;  %v1051_v62 = vpack.c.bf16 %v431_v61, %v430_v60 }
  0x43   :  { %1002 = vmatprep.subr.bf16.mxu0 %v1121_v0 }
  0x46   :  { %1004 = vmatpush3.bf16.msra.mxu0 %v1003_v3  ;;  %v1054_v3 = vpack.c.bf16 %v433_v2, %v432_v63 }
  0x47   :  { %1005 = vmatprep.subr.bf16.mxu0 %v1121_v0 }
  0x4a   :  { %1007 = vmatpush3.bf16.msra.mxu0 %v1006_v6  ;;  %v1057_v6 = vpack.c.bf16 %v435_v5, %v434_v4 }
  0x4b   :  { %1008 = vmatprep.subr.bf16.mxu0 %v1121_v0 }
  0x4e   :  { %1010 = vmatpush3.bf16.msra.mxu0 %v1009_v9 }
  0x4f   :  { %1011 = vmatprep.subr.bf16.mxu0 %v1121_v0 }
  0x52   :  { %1013 = vmatpush3.bf16.msra.mxu0 %v1012_v17 }
  0x53   :  { %1038 = vmatprep.subr.bf16.mxu0 %v1121_v0 }
 0x108   :  { %v118_v11 = vpop.f32.mrb[0].mxu0 }
 0x109   :  { %v119_v12 = vadd.f32 %v619_v10, %v118_v11  ;;  %v766_v13 = vpop.f32.mrb[1].mxu0 }
 0x10b   :  { %v122_v14 = vmax.f32 %v119_v12, 0.0  ;;  %v314_v12 = vlaneseq }
 0x10d   :  { %800 = vmatmul.mubr.f32.vlgmr.msra.gmra.mrb[0].mxu1 %v122_v14  ;;  %v315_v14 = vand.u32 127, %v314_v12 }
 0x10e   :  { %869 = vmatprep.mubr.msk.f32.mxu1 %vm1122_vm0, %v1123_v1  ;;  %1016 = vmatpush3.bf16.msra.mxu1 %v1015_v21  ;;  %v1060_v21 = vpack.c.bf16 %v437_v20, %v436_v19 }
 0x10f   :  { %1017 = vmatprep.subr.bf16.mxu1 %v1121_v0  ;;  %vm316_vm1 = vcmp.ge.s32.totalorder %v315_v14, 64  ;;  %vm317_vm2 = vcmp.lt.s32.totalorder %v315_v14, 72 }
 0x110   :  { %vm318_vm3 = vmand %vm316_vm1, %vm317_vm2 }
 0x112   :  { %1019 = vmatpush3.bf16.msra.mxu1 %v1018_v23  ;;  %v519_v23 = vld [vmem:[#allocation2 + $0x288] sm:$0xff] }
 0x113   :  { %1020 = vmatprep.subr.bf16.mxu1 %v1121_v0  ;;  %v1063_v25 = vpack.c.bf16 %v519_v23, %v518_v22 }
 0x116   :  { %1022 = vmatpush3.bf16.msra.mxu1 %v1021_v26  ;;  %v521_v26 = vld [vmem:[#allocation2 + $0x298] sm:$0xff] }
 0x117   :  { %1023 = vmatprep.subr.bf16.mxu1 %v1121_v0 }
 0x11a   :  { %1025 = vmatpush3.bf16.msra.mxu1 %v1024_v34  ;;  %v1075_v34 = vpack.c.bf16 %v527_v33, %v526_v32 }
 0x11b   :  { %1026 = vmatprep.subr.bf16.mxu1 %v1121_v0 }
 0x11e   :  { %1028 = vmatpush3.bf16.msra.mxu1 %v1027_v37  ;;  %v1078_v37 = vpack.c.bf16 %v529_v36, %v528_v35 }
 0x11f   :  { %1029 = vmatprep.subr.bf16.mxu1 %v1121_v0 }
 0x122   :  { %1031 = vmatpush3.bf16.msra.mxu1 %v1030_v40  ;;  %v1081_v40 = vpack.c.bf16 %v531_v39, %v530_v38 }
 0x123   :  { %1032 = vmatprep.subr.bf16.mxu1 %v1121_v0 }
 0x126   :  { %1034 = vmatpush3.bf16.msra.mxu1 %v1033_v43 }
 0x127   :  { %1035 = vmatprep.subr.bf16.mxu1 %v1121_v0 }
 0x12a   :  { %1037 = vmatpush3.bf16.msra.mxu1 %v1036_v46  ;;  %v532_v46 = vld [vmem:[#allocation2 + $0x2f0] sm:$0xff] }
 0x12b   :  { %1062 = vmatprep.subr.bf16.mxu1 %v1121_v0  ;;  %v1084_v49 = vpack.c.bf16 %v533_v48, %v532_v46 }
 0x1e0   :  { %v214_v28 = vpop.f32.mrb[0].mxu1 }
 0x1e1   :  { %v215_v29 = vadd.f32 %v621_v27, %v214_v28  ;;  %v801_v30 = vpop.f32.mrb[1].mxu1  ;;  %v1066_v27 = vpack.c.bf16 %v521_v26, %v520_v24  ;;  %v523_v28 = vld [vmem:[#allocation2 + $0x2a8] sm:$0xff] }
 0x1e2   :  { %v525_v30 = vld [vmem:[#allocation2 + $0x2b8] sm:$0xff] }
 0x1e3   :  { %v218_v31 = vmax.f32 %v215_v29, 0.0 }
 0x1e5   :  { %835 = vmatmul.mubr.f32.vlgmr.msra.gmra.mrb[2].mxu0 %v218_v31 }
 0x1e6   :  { %904 = vmatprep.mubr.msk.f32.mxu0 %vm1122_vm0, %v1123_v1  ;;  %1040 = vmatpush3.bf16.msra.mxu0 %v1039_v51 }
 0x1e7   :  { %1041 = vmatprep.subr.bf16.mxu0 %v1121_v0 }
 0x1ea   :  { %1043 = vmatpush3.bf16.msra.mxu0 %v1042_v53 }
 0x1eb   :  { %1044 = vmatprep.subr.bf16.mxu0 %v1121_v0 }
 0x1ee   :  { %1046 = vmatpush3.bf16.msra.mxu0 %v1045_v56 }
 0x1ef   :  { %1047 = vmatprep.subr.bf16.mxu0 %v1121_v0 }
 0x1f2   :  { %1049 = vmatpush3.bf16.msra.mxu0 %v1048_v59 }
 0x1f3   :  { %1050 = vmatprep.subr.bf16.mxu0 %v1121_v0 }
 0x1f6   :  { %1052 = vmatpush3.bf16.msra.mxu0 %v1051_v62 }
 0x1f7   :  { %1053 = vmatprep.subr.bf16.mxu0 %v1121_v0 }
 0x1fa   :  { %1055 = vmatpush3.bf16.msra.mxu0 %v1054_v3 }
 0x1fb   :  { %1056 = vmatprep.subr.bf16.mxu0 %v1121_v0 }
 0x1fe   :  { %1058 = vmatpush3.bf16.msra.mxu0 %v1057_v6 }
 0x1ff   :  { %1059 = vmatprep.subr.bf16.mxu0 %v1121_v0 }
 0x202   :  { %1061 = vmatpush3.bf16.msra.mxu0 %v1060_v21 }
 0x2b8   :  { %v310_v8 = vpop.f32.mrb[2].mxu0 }
 0x2b9   :  { %v1222_v9 = vadd.f32 %v623_v7, %v310_v8  ;;  %v836_v10 = vpop.f32.mrb[3].mxu0 }
 0x2bb   :  { %v320_v11 = vmul.f32 0.5, %v1222_v9  ;;  %v319_v17 = vsel %vm318_vm3, %v1222_v9, 0.0 }
 0x2bd   :  { %v321_v13 = vmul.f32 1.442695, %v320_v11 }
 0x2bf   :  { %1092 = vpow2.f32 %v321_v13 }
 0x2c9   :  { %v1093_v15 = vpop.eup %1092 }
 0x2ca   :  { %v323_v16 = vmul.f32 %v1093_v15, %v1178_v47  ;;  %v522_v47 = vld [vmem:[#allocation2 + $0x2a0] sm:$0xff] }
 0x2cb   :  { %v1069_v29 = vpack.c.bf16 %v523_v28, %v522_v47 }
 0x2cc   :  { %v324_v18 = vadd.f32 %v323_v16, %v319_v17 }
 0x2ce   :  { %870 = vmatmul.mubr.f32.vlgmr.msra.gmra.mrb[2].mxu1 %v324_v18 }
 0x2cf   :  { %939 = vmatprep.mubr.msk.f32.mxu1 %vm1122_vm0, %v1123_v1  ;;  %1064 = vmatpush3.bf16.msra.mxu1 %v1063_v25  ;;  %v524_v1 = vld [vmem:[#allocation2 + $0x2b0] sm:$0xff] }
 0x2d0   :  { %1065 = vmatprep.subr.bf16.mxu1 %v1121_v0  ;;  %v1072_v31 = vpack.c.bf16 %v525_v30, %v524_v1 }
 0x2d3   :  { %1067 = vmatpush3.bf16.msra.mxu1 %v1066_v27 }
 0x2d4   :  { %1068 = vmatprep.subr.bf16.mxu1 %v1121_v0 }
 0x2d7   :  { %1070 = vmatpush3.bf16.msra.mxu1 %v1069_v29 }
 0x2d8   :  { %1071 = vmatprep.subr.bf16.mxu1 %v1121_v0 }
 0x2db   :  { %1073 = vmatpush3.bf16.msra.mxu1 %v1072_v31 }
 0x2dc   :  { %1074 = vmatprep.subr.bf16.mxu1 %v1121_v0 }
 0x2df   :  { %1076 = vmatpush3.bf16.msra.mxu1 %v1075_v34 }
 0x2e0   :  { %1077 = vmatprep.subr.bf16.mxu1 %v1121_v0 }
 0x2e3   :  { %1079 = vmatpush3.bf16.msra.mxu1 %v1078_v37 }
 0x2e4   :  { %1080 = vmatprep.subr.bf16.mxu1 %v1121_v0 }
 0x2e7   :  { %1082 = vmatpush3.bf16.msra.mxu1 %v1081_v40 }
 0x2e8   :  { %1083 = vmatprep.subr.bf16.mxu1 %v1121_v0 }
 0x2eb   :  { %1085 = vmatpush3.bf16.msra.mxu1 %v1084_v49 }
 0x3a1   :  { %v416_v42 = vpop.f32.mrb[2].mxu1 }
 0x3a2   :  { %v417_v43 = vadd.f32 %v625_v41, %v416_v42  ;;  %v871_v44 = vpop.f32.mrb[3].mxu1 }
 0x3a4   :  { %v420_v45 = vmax.f32 %v417_v43, 0.0 }
 0x3a6   :  { %905 = vmatmul.mubr.f32.vlgmr.msra.gmra.mrb[4].mxu0 %v420_v45 }
 0x479   :  { %v512_v51 = vpop.f32.mrb[4].mxu0 }
 0x47a   :  { %v513_v52 = vadd.f32 %v627_v50, %v512_v51  ;;  %v906_v0 = vpop.f32.mrb[5].mxu0 }
 0x47c   :  { %v516_v53 = vmax.f32 %v513_v52, 0.0 }
 0x47e   :  { %940 = vmatmul.mubr.f32.vlgmr.msra.gmra.mrb[4].mxu1 %v516_v53 }
 0x551   :  { %v608_v55 = vpop.f32.mrb[4].mxu1 }
 0x552   :  { %v609_v56 = vadd.f32 %v629_v54, %v608_v55  ;;  %v941_v57 = vpop.f32.mrb[5].mxu1 }
 0x554   :  { %v612_v58 = vadd.f32 %v609_v56, %v1222_v9 }
 0x556   :  { %613 = vst [vmem:[%s1252_s3] sm:$0xff] %v612_v58 }
 0x557   :  { %618 = vsyncpa [#allocation3], 1 }

</bundles_post_ra>
